<compile_context>
chip_gen: v7x
topology: tpu7x:2x2x1
jax: 0.10.0
libtpu: 0.0.40
codegen_flags: <defaults>
</compile_context>

<pallas_src>
import math
import functools

import jax
import jax.numpy as jnp
from jax.experimental import pallas as pl
from jax.experimental.pallas import tpu as pltpu


# --------------------------------------------------------------------------
# Kernels
# --------------------------------------------------------------------------
def _support_kernel(x_ref, w_ref, out_ref):
    # support row-block = x row-block @ w   (f32 accumulate on the MXU)
    out_ref[...] = jnp.dot(
        x_ref[...], w_ref[...], preferred_element_type=jnp.float32
    ).astype(out_ref.dtype)


def _aggregate_kernel_resident(adj_ref, sup_ref, out_ref, *, tk, compute_dtype):
    # out row-block = sum_k adj[i-block, k-block] @ support[k-block, :]
    # `sup_ref` holds the FULL (N_pad, f_out) support matrix, VMEM-resident
    # (constant block index) -> DMA'd from HBM exactly once for the whole grid.
    k = pl.program_id(1)

    @pl.when(k == 0)
    def _():
        out_ref[...] = jnp.zeros_like(out_ref)

    start = pl.multiple_of(k * tk, tk)
    adj_blk = adj_ref[...].astype(compute_dtype)            # cast in-kernel (no HBM pre-pass)
    sup_blk = sup_ref[pl.ds(start, tk), :].astype(compute_dtype)
    out_ref[...] += jnp.dot(adj_blk, sup_blk, preferred_element_type=jnp.float32)


def _aggregate_kernel_streamed(adj_ref, sup_ref, out_ref, *, compute_dtype):
    # Fallback when support does not fit in VMEM: support streamed per k-tile.
    k = pl.program_id(1)

    @pl.when(k == 0)
    def _():
        out_ref[...] = jnp.zeros_like(out_ref)

    out_ref[...] += jnp.dot(
        adj_ref[...].astype(compute_dtype),
        sup_ref[...].astype(compute_dtype),
        preferred_element_type=jnp.float32,
    )


# --------------------------------------------------------------------------
# Helpers
# --------------------------------------------------------------------------
def _round_up(x, m):
    return ((x + m - 1) // m) * m


def _pick_tile(dim, requested, align):
    """Largest multiple of `align` <= requested that divides `dim`."""
    t = (min(requested, dim) // align) * align
    while t >= align:
        if dim % t == 0:
            return t
        t -= align
    return dim


def _vmem_limit(buffer_bytes):
    """Generation-aware scoped-VMEM limit: 2x headroom over the estimated
    working set, floored at 32 MiB and capped at ~75% of physical VMEM
    (leaves Mosaic-internal-scratch headroom: ~48 MiB on v7x, ~96 MiB on
    v5e/v6e)."""
    try:
        cap = pltpu.get_tpu_info().vmem_capacity_bytes
    except Exception:
        cap = 64 * 1024 * 1024  # conservative (v7x-sized) fallback
    cap = (cap * 3) // 4
    return int(min(max(2 * buffer_bytes, 32 * 1024 * 1024), cap))


# --------------------------------------------------------------------------
# Wrapper
# --------------------------------------------------------------------------
@functools.partial(jax.jit, static_argnames=("tm", "tk", "compute_dtype"))
def graph_convolution(x, adj, weight, *, tm=512, tk=2048,
                      compute_dtype=jnp.bfloat16):
    N, f_in = x.shape
    f_out = weight.shape[1]
    assert adj.shape == (N, N)
    assert weight.shape[0] == f_in

    # Pad the node axis to a multiple of 128 so both the sublane-aligned row
    # tile and the lane-aligned contraction tile always exist (never fall
    # back to a whole-axis block).  Zero padding is exact for this op.
    N_pad = _round_up(N, 128)
    if N_pad != N:
        x = jnp.pad(x, ((0, N_pad - N), (0, 0)))
        adj = jnp.pad(adj, ((0, N_pad - N), (0, N_pad - N)))

    # Row tile: 16-aligned (bf16 sublane packing); K tile: 128-aligned (lanes).
    tm_ = _pick_tile(N_pad, tm, 16)
    tk_ = _pick_tile(N_pad, tk, 128)

    # ------------- Stage 1: support = x @ w  (kept in f32: it is small) -----
    s1_vmem = 2 * (tm_ * f_in + f_in * f_out + tm_ * f_out) * 4
    support = pl.pallas_call(
        _support_kernel,
        out_shape=jax.ShapeDtypeStruct((N_pad, f_out), jnp.float32),
        grid_spec=pltpu.PrefetchScalarGridSpec(
            num_scalar_prefetch=0,
            grid=(N_pad // tm_,),
            in_specs=[
                pl.BlockSpec((tm_, f_in), lambda i: (i, 0)),    # x row-block
                pl.BlockSpec((f_in, f_out), lambda i: (0, 0)),  # weight (resident)
            ],
            out_specs=pl.BlockSpec((tm_, f_out), lambda i: (i, 0)),
        ),
        compiler_params=pltpu.CompilerParams(
            dimension_semantics=("parallel",),
            vmem_limit_bytes=_vmem_limit(s1_vmem),
        ),
        cost_estimate=pl.CostEstimate(
            flops=2 * N_pad * f_in * f_out,
            transcendentals=0,
            bytes_accessed=(N_pad * f_in + f_in * f_out + N_pad * f_out) * 4,
        ),
    )(x, weight)

    # ------------- Stage 2: output = adj @ support  (HBM-bound on adj) ------
    # adj stays f32 in HBM (no standalone convert pre-pass); tiles are cast to
    # `compute_dtype` inside the kernel right before the MXU dot.
    sup_bytes = N_pad * f_out * 4
    resident = sup_bytes <= 8 * 1024 * 1024  # keep support VMEM-resident if small

    if resident:
        kernel = functools.partial(_aggregate_kernel_resident,
                                   tk=tk_, compute_dtype=compute_dtype)
        sup_spec = pl.BlockSpec((N_pad, f_out), lambda i, k: (0, 0))
        sup_traffic = sup_bytes                       # DMA'd once
        s2_vmem = (2 * tm_ * tk_ * 4                  # adj tiles (double-buffered)
                   + 2 * sup_bytes                    # resident support
                   + 2 * tm_ * f_out * 4)             # f32 out/accumulator tiles
    else:
        kernel = functools.partial(_aggregate_kernel_streamed,
                                   compute_dtype=compute_dtype)
        sup_spec = pl.BlockSpec((tk_, f_out), lambda i, k: (k, 0))
        sup_traffic = (N_pad // tm_) * sup_bytes      # re-fetched per row-tile
        s2_vmem = (2 * tm_ * tk_ * 4
                   + 2 * tk_ * f_out * 4
                   + 2 * tm_ * f_out * 4)

    out = pl.pallas_call(
        kernel,
        out_shape=jax.ShapeDtypeStruct((N_pad, f_out), jnp.float32),
        grid_spec=pltpu.PrefetchScalarGridSpec(
            num_scalar_prefetch=0,
            grid=(N_pad // tm_, N_pad // tk_),
            in_specs=[
                # TODO(synk): if xprof still shows exposed DMA on adj after the
                # tile bump, add pipeline_mode=pl.Buffered(3) on this spec.
                pl.BlockSpec((tm_, tk_), lambda i, k: (i, k)),  # adj block (f32)
                sup_spec,
            ],
            # Out block index constant over k -> VMEM-resident f32 accumulator.
            out_specs=pl.BlockSpec((tm_, f_out), lambda i, k: (i, 0)),
        ),
        compiler_params=pltpu.CompilerParams(
            # Rows independent -> "parallel" (megacore); K is a reduction with
            # a persistent output accumulator -> "arbitrary", placed last.
            dimension_semantics=("parallel", "arbitrary"),
            vmem_limit_bytes=_vmem_limit(s2_vmem),
        ),
        cost_estimate=pl.CostEstimate(
            flops=2 * N_pad * N_pad * f_out,
            transcendentals=0,
            bytes_accessed=N_pad * N_pad * 4 + sup_traffic + N_pad * f_out * 4,
        ),
    )(adj, support)

    # TODO(synk): if f_out grows beyond ~512, add an output-column grid axis
    # ("parallel", tn a multiple of 256 on v6e/v7x) tiling out/support on
    # f_out, and/or fuse stage 1 into stage 2 (compute the support block from
    # x and a resident weight on the fly) to drop the support HBM round trip.
    if N_pad != N:
        out = out[:N]
    return out


# --------------------------------------------------------------------------
# Self-test
# --------------------------------------------------------------------------
if __name__ == "__main__":
    # Small, tiling-friendly shapes: N nodes, in/out feature dims.
    N, in_features, out_features = 256, 64, 128

    key = jax.random.PRNGKey(0)
    k_x, k_adj, k_w = jax.random.split(key, 3)

    # Deterministic parameter init mirroring reset_parameters():
    # uniform(-stdv, stdv), stdv = 1/sqrt(out_features)
    stdv = 1.0 / math.sqrt(out_features)
    weight = jax.random.uniform(
        k_w, (in_features, out_features), dtype=jnp.float32,
        minval=-stdv, maxval=stdv,
    )

    x = jax.random.normal(k_x, (N, in_features), dtype=jnp.float32)
    # Row-normalized random adjacency (any dense [N, N] works for the kernel).
    adj_raw = jax.random.uniform(k_adj, (N, N), dtype=jnp.float32)
    adj = adj_raw / jnp.sum(adj_raw, axis=1, keepdims=True)

    out = graph_convolution(x, adj, weight)
    jax.block_until_ready(out)

    # Reference check (plain JAX, f32).  adj/support tiles are cast to bf16
    # inside the kernel with f32 accumulation, so tolerance is relaxed.
    ref = adj @ (x @ weight)
    assert out.shape == (N, out_features)
    assert jnp.allclose(out, ref, atol=1e-2, rtol=2e-2), float(
        jnp.max(jnp.abs(out - ref))
    )

    print("KERNEL_OK")
</pallas_src>

<mosaic_0001>
module attributes {stable_mosaic.version = 11 : i64} {
  func.func @_aggregate_kernel_resident(%arg0: i32, %arg1: i32, %arg2: memref<256x256xf32, #tpu.memory_space<vmem>>, %arg3: memref<256x128xf32, #tpu.memory_space<vmem>>, %arg4: memref<256x128xf32, #tpu.memory_space<vmem>>) attributes {dimension_semantics = [#tpu.dimension_semantics<parallel>, #tpu.dimension_semantics<arbitrary>], iteration_bounds = array<i64: 1, 1>, scalar_prefetch = 0 : i64, scratch_operands = 0 : i64, tpu.core_type = #tpu.core_type<tc>, window_params = [{transform_indices = @transform_0, window_bounds = array<i64: 256, 256>}, {pipeline_mode = #tpu.pipeline_mode<synchronous>, transform_indices = @transform_1, window_bounds = array<i64: 256, 128>}, {transform_indices = @transform_2, window_bounds = array<i64: 256, 128>}]} {
    %c0_i32 = arith.constant 0 : i32
    %0 = arith.cmpi eq, %arg1, %c0_i32 : i32
    %1 = arith.extui %0 : i1 to i32
    %c0_i32_0 = arith.constant 0 : i32
    %2 = arith.cmpi ne, %1, %c0_i32_0 : i32
    scf.if %2 {
      %cst_7 = arith.constant 0.000000e+00 : f32
      %14 = vector.broadcast %cst_7 : f32 to vector<256x128xf32>
      %c0_8 = arith.constant 0 : index
      %c0_9 = arith.constant 0 : index
      %15 = vector.load %arg4[%c0_8, %c0_9] : memref<256x128xf32, #tpu.memory_space<vmem>>, vector<256x128xf32>
      tpu.vector_store %arg4[%c0_8, %c0_9], %14 {strides = array<i32>} : memref<256x128xf32, #tpu.memory_space<vmem>>, vector<256x128xf32>,
    } else {
    }
    %c256_i32 = arith.constant 256 : i32
    %3 = arith.muli %arg1, %c256_i32 : i32
    %4 = tpu.assume_multiple %3, 256 : i32
    %c0 = arith.constant 0 : index
    %c0_1 = arith.constant 0 : index
    %5 = vector.load %arg2[%c0, %c0_1] : memref<256x256xf32, #tpu.memory_space<vmem>>, vector<256x256xf32>
    %6 = arith.truncf %5 : vector<256x256xf32> to vector<256x256xbf16>
    %7 = arith.index_cast %4 : i32 to index
    %c0_2 = arith.constant 0 : index
    %8 = vector.load %arg3[%7, %c0_2] : memref<256x128xf32, #tpu.memory_space<vmem>>, vector<256x128xf32>
    %9 = arith.truncf %8 : vector<256x128xf32> to vector<256x128xbf16>
    %c0_3 = arith.constant 0 : index
    %c0_4 = arith.constant 0 : index
    %10 = vector.load %arg4[%c0_3, %c0_4] : memref<256x128xf32, #tpu.memory_space<vmem>>, vector<256x128xf32>
    %cst = arith.constant dense<0.000000e+00> : vector<256x128xf32>
    %11 = tpu.matmul %6, %9, %cst {dimension_numbers = #tpu.dot_dimension_numbers<[1], [0], [0], [1], [0, 0, 1, 1], [], []>} : vector<256x256xbf16>, vector<256x128xbf16>, vector<256x128xf32> -> vector<256x128xf32>
    %12 = arith.addf %10, %11 : vector<256x128xf32>
    %c0_5 = arith.constant 0 : index
    %c0_6 = arith.constant 0 : index
    %13 = vector.load %arg4[%c0_5, %c0_6] : memref<256x128xf32, #tpu.memory_space<vmem>>, vector<256x128xf32>
    tpu.vector_store %arg4[%c0_5, %c0_6], %12 {strides = array<i32>} : memref<256x128xf32, #tpu.memory_space<vmem>>, vector<256x128xf32>,
    return
  }
  func.func @transform_0(%arg0: i32, %arg1: i32) -> (i32, i32) {
    %c0_i32 = arith.constant 0 : i32
    return %arg0, %arg1 : i32, i32
  }
  func.func @transform_1(%arg0: i32, %arg1: i32) -> (i32, i32) {
    %c0_i32 = arith.constant 0 : i32
    %c0_i32_0 = arith.constant 0 : i32
    %c0_i32_1 = arith.constant 0 : i32
    return %c0_i32, %c0_i32_0 : i32, i32
  }
  func.func @transform_2(%arg0: i32, %arg1: i32) -> (i32, i32) {
    %c0_i32 = arith.constant 0 : i32
    %c0_i32_0 = arith.constant 0 : i32
    return %arg0, %c0_i32 : i32, i32
  }
}

module attributes {stable_mosaic.version = 11 : i64} {
  func.func @_support_kernel(%arg0: i32, %arg1: memref<256x64xf32, #tpu.memory_space<vmem>>, %arg2: memref<64x128xf32, #tpu.memory_space<vmem>>, %arg3: memref<256x128xf32, #tpu.memory_space<vmem>>) attributes {dimension_semantics = [#tpu.dimension_semantics<parallel>], iteration_bounds = array<i64: 1>, scalar_prefetch = 0 : i64, scratch_operands = 0 : i64, tpu.core_type = #tpu.core_type<tc>, window_params = [{transform_indices = @transform_0, window_bounds = array<i64: 256, 64>}, {pipeline_mode = #tpu.pipeline_mode<synchronous>, transform_indices = @transform_1, window_bounds = array<i64: 64, 128>}, {transform_indices = @transform_2, window_bounds = array<i64: 256, 128>}]} {
    %c0 = arith.constant 0 : index
    %c0_0 = arith.constant 0 : index
    %0 = vector.load %arg1[%c0, %c0_0] : memref<256x64xf32, #tpu.memory_space<vmem>>, vector<256x64xf32>
    %c0_1 = arith.constant 0 : index
    %c0_2 = arith.constant 0 : index
    %1 = vector.load %arg2[%c0_1, %c0_2] : memref<64x128xf32, #tpu.memory_space<vmem>>, vector<64x128xf32>
    %cst = arith.constant dense<0.000000e+00> : vector<256x128xf32>
    %2 = tpu.matmul %0, %1, %cst {dimension_numbers = #tpu.dot_dimension_numbers<[1], [0], [0], [1], [0, 0, 1, 1], [], []>} : vector<256x64xf32>, vector<64x128xf32>, vector<256x128xf32> -> vector<256x128xf32>
    %c0_3 = arith.constant 0 : index
    %c0_4 = arith.constant 0 : index
    %3 = vector.load %arg3[%c0_3, %c0_4] : memref<256x128xf32, #tpu.memory_space<vmem>>, vector<256x128xf32>
    tpu.vector_store %arg3[%c0_3, %c0_4], %2 {strides = array<i32>} : memref<256x128xf32, #tpu.memory_space<vmem>>, vector<256x128xf32>,
    return
  }
  func.func @transform_0(%arg0: i32) -> (i32, i32) {
    %c0_i32 = arith.constant 0 : i32
    %c0_i32_0 = arith.constant 0 : i32
    return %arg0, %c0_i32 : i32, i32
  }
  func.func @transform_1(%arg0: i32) -> (i32, i32) {
    %c0_i32 = arith.constant 0 : i32
    %c0_i32_0 = arith.constant 0 : i32
    %c0_i32_1 = arith.constant 0 : i32
    return %c0_i32, %c0_i32_0 : i32, i32
  }
  func.func @transform_2(%arg0: i32) -> (i32, i32) {
    %c0_i32 = arith.constant 0 : i32
    %c0_i32_0 = arith.constant 0 : i32
    return %arg0, %c0_i32 : i32, i32
  }
}

</mosaic_0001>

<bundles_post_ra>
// kernel: graph_convolution.2
= control target key start
LH: loop header
LB: loop body
LE: loop exit
PB: predicated region body
PF: predicated region fallthrough
CT: control target
= control target key end

     0   :  { %vm51_vm0 = vcmask 523264   ;;  %s832_s1 = inlined_call_operand.vmem [shape: f32[64,128], index: 1, kind: input, shape index: {}]   ;;  %s833_s0 = inlined_call_operand.vmem [shape: f32[256,64], index: 0, kind: input, shape index: {}]   ;;  %s834_s2 = inlined_call_operand.vmem [shape: f32[256,128], index: 2, kind: output, shape index: {}]  }
   0x1   :  { %v43_v0 = vld [vmem:[%s832_s1] sm:$0xff]  ;;  %v44_v1 = vld [vmem:[%s832_s1 + $0x8] sm:$0xff]  ;;  %v45_v2 = vld [vmem:[%s832_s1 + $0x10] sm:$0xff] }
   0x2   :  { %v545_v3 = vpack.c.bf16 %v44_v1, %v43_v0  ;;  %v46_v4 = vld [vmem:[%s832_s1 + $0x18] sm:$0xff]  ;;  %v47_v6 = vld [vmem:[%s832_s1 + $0x20] sm:$0xff]  ;;  %v48_v7 = vld [vmem:[%s832_s1 + $0x28] sm:$0xff] }
   0x3   :  { %v549_v5 = vpack.c.bf16 %v46_v4, %v45_v2  ;;  %v11_v8 = vld [vmem:[%s833_s0] sm:$0xff]  ;;  %v553_v10 = vpack.c.bf16 %v48_v7, %v47_v6  ;;  %v49_v11 = vld [vmem:[%s832_s1 + $0x30] sm:$0xff]  ;;  %v50_v12 = vld [vmem:[%s832_s1 + $0x38] sm:$0xff] }
   0x4   :  { %546 = vmatprep.subr.bf16.mxu0 %v545_v3  ;;  %561 = vmatprep.subr.bf16.mxu1 %v545_v3  ;;  %v27_v9 = vld [vmem:[%s833_s0 + $0x80] sm:$0xff]  ;;  %v557_v13 = vpack.c.bf16 %v50_v12, %v49_v11  ;;  %v12_v14 = vld [vmem:[%s833_s0 + $0x8] sm:$0xff]  ;;  %v13_v16 = vld [vmem:[%s833_s0 + $0x10] sm:$0xff] }
   0x5   :  { %548 = vmatpush3.bf16.msra.mxu0 %v545_v3  ;;  %565 = vmatpush3.bf16.msra.mxu1 %v545_v3  ;;  %v28_v15 = vld [vmem:[%s833_s0 + $0x88] sm:$0xff]  ;;  %v29_v17 = vld [vmem:[%s833_s0 + $0x90] sm:$0xff]  ;;  %v14_v18 = vld [vmem:[%s833_s0 + $0x18] sm:$0xff] }
   0x6   :  { %550 = vmatprep.subr.bf16.mxu0 %v549_v5  ;;  %562 = vmatprep.subr.bf16.mxu1 %v549_v5  ;;  %v30_v19 = vld [vmem:[%s833_s0 + $0x98] sm:$0xff]  ;;  %v15_v20 = vld [vmem:[%s833_s0 + $0x20] sm:$0xff]  ;;  %v16_v22 = vld [vmem:[%s833_s0 + $0x28] sm:$0xff] }
   0x7   :  { %497 = vmatprep.mubr.msk.f32.mxu0 %vm51_vm0, %v11_v8  ;;  %521 = vmatprep.mubr.msk.f32.mxu1 %vm51_vm0, %v27_v9  ;;  %v31_v21 = vld [vmem:[%s833_s0 + $0xa0] sm:$0xff]  ;;  %v32_v23 = vld [vmem:[%s833_s0 + $0xa8] sm:$0xff]  ;;  %v17_v24 = vld [vmem:[%s833_s0 + $0x30] sm:$0xff] }
   0x8   :  { %v33_v25 = vld [vmem:[%s833_s0 + $0xb0] sm:$0xff]  ;;  %v18_v26 = vld [vmem:[%s833_s0 + $0x38] sm:$0xff]  ;;  %v19_v28 = vld [vmem:[%s833_s0 + $0x40] sm:$0xff] }
   0x9   :  { %552 = vmatpush3.bf16.msra.mxu0 %v549_v5  ;;  %566 = vmatpush3.bf16.msra.mxu1 %v549_v5  ;;  %v34_v27 = vld [vmem:[%s833_s0 + $0xb8] sm:$0xff]  ;;  %v35_v29 = vld [vmem:[%s833_s0 + $0xc0] sm:$0xff]  ;;  %v20_v30 = vld [vmem:[%s833_s0 + $0x48] sm:$0xff] }
   0xa   :  { %554 = vmatprep.subr.bf16.mxu0 %v553_v10  ;;  %563 = vmatprep.subr.bf16.mxu1 %v553_v10  ;;  %v36_v31 = vld [vmem:[%s833_s0 + $0xc8] sm:$0xff]  ;;  %v21_v32 = vld [vmem:[%s833_s0 + $0x50] sm:$0xff]  ;;  %v22_v34 = vld [vmem:[%s833_s0 + $0x58] sm:$0xff] }
   0xb   :  { %v37_v33 = vld [vmem:[%s833_s0 + $0xd0] sm:$0xff]  ;;  %v38_v35 = vld [vmem:[%s833_s0 + $0xd8] sm:$0xff]  ;;  %v23_v36 = vld [vmem:[%s833_s0 + $0x60] sm:$0xff] }
   0xc   :  { %v39_v37 = vld [vmem:[%s833_s0 + $0xe0] sm:$0xff]  ;;  %v24_v38 = vld [vmem:[%s833_s0 + $0x68] sm:$0xff]  ;;  %v25_v40 = vld [vmem:[%s833_s0 + $0x70] sm:$0xff] }
   0xd   :  { %556 = vmatpush3.bf16.msra.mxu0 %v553_v10  ;;  %567 = vmatpush3.bf16.msra.mxu1 %v553_v10  ;;  %v40_v39 = vld [vmem:[%s833_s0 + $0xe8] sm:$0xff]  ;;  %v41_v41 = vld [vmem:[%s833_s0 + $0xf0] sm:$0xff]  ;;  %v26_v42 = vld [vmem:[%s833_s0 + $0x78] sm:$0xff] }
   0xe   :  { %558 = vmatprep.subr.bf16.mxu0 %v557_v13  ;;  %564 = vmatprep.subr.bf16.mxu1 %v557_v13  ;;  %v42_v43 = vld [vmem:[%s833_s0 + $0xf8] sm:$0xff] }
  0x11   :  { %560 = vmatpush3.bf16.msra.mxu0 %v557_v13  ;;  %568 = vmatpush3.bf16.msra.mxu1 %v557_v13 }
  0x14   :  { %498 = vmatmul.mubr.msk.f32.vlgmr.msra.gmra.mrb[0].mxu0 %vm51_vm0, %v12_v14  ;;  %522 = vmatmul.mubr.msk.f32.vlgmr.msra.gmra.mrb[0].mxu1 %vm51_vm0, %v28_v15 }
  0x15   :  { %500 = vmatprep.mubr.msk.f32.mxu0 %vm51_vm0, %v13_v16  ;;  %524 = vmatprep.mubr.msk.f32.mxu1 %vm51_vm0, %v29_v17 }
  0x18   :  { %501 = vmatmul.mubr.msk.f32.gmra.mrb[2].mxu0 %vm51_vm0, %v14_v18  ;;  %525 = vmatmul.mubr.msk.f32.gmra.mrb[2].mxu1 %vm51_vm0, %v30_v19 }
  0x19   :  { %503 = vmatprep.mubr.msk.f32.mxu0 %vm51_vm0, %v15_v20  ;;  %527 = vmatprep.mubr.msk.f32.mxu1 %vm51_vm0, %v31_v21 }
  0x1c   :  { %504 = vmatmul.mubr.msk.f32.gmra.mrb[4].mxu0 %vm51_vm0, %v16_v22  ;;  %528 = vmatmul.mubr.msk.f32.gmra.mrb[4].mxu1 %vm51_vm0, %v32_v23 }
  0x1d   :  { %506 = vmatprep.mubr.msk.f32.mxu0 %vm51_vm0, %v17_v24  ;;  %530 = vmatprep.mubr.msk.f32.mxu1 %vm51_vm0, %v33_v25 }
  0x20   :  { %507 = vmatmul.mubr.msk.f32.gmra.mrb[6].mxu0 %vm51_vm0, %v18_v26  ;;  %531 = vmatmul.mubr.msk.f32.gmra.mrb[6].mxu1 %vm51_vm0, %v34_v27 }
  0x21   :  { %509 = vmatprep.mubr.msk.f32.mxu0 %vm51_vm0, %v19_v28  ;;  %533 = vmatprep.mubr.msk.f32.mxu1 %vm51_vm0, %v35_v29 }
  0x24   :  { %510 = vmatmul.mubr.msk.f32.gmra.mrb[8].mxu0 %vm51_vm0, %v20_v30  ;;  %534 = vmatmul.mubr.msk.f32.gmra.mrb[8].mxu1 %vm51_vm0, %v36_v31 }
  0x25   :  { %512 = vmatprep.mubr.msk.f32.mxu0 %vm51_vm0, %v21_v32  ;;  %536 = vmatprep.mubr.msk.f32.mxu1 %vm51_vm0, %v37_v33 }
  0x28   :  { %513 = vmatmul.mubr.msk.f32.gmra.mrb[10].mxu0 %vm51_vm0, %v22_v34  ;;  %537 = vmatmul.mubr.msk.f32.gmra.mrb[10].mxu1 %vm51_vm0, %v38_v35 }
  0x29   :  { %515 = vmatprep.mubr.msk.f32.mxu0 %vm51_vm0, %v23_v36  ;;  %539 = vmatprep.mubr.msk.f32.mxu1 %vm51_vm0, %v39_v37 }
  0x2c   :  { %516 = vmatmul.mubr.msk.f32.gmra.mrb[12].mxu0 %vm51_vm0, %v24_v38  ;;  %540 = vmatmul.mubr.msk.f32.gmra.mrb[12].mxu1 %vm51_vm0, %v40_v39 }
  0x2d   :  { %518 = vmatprep.mubr.msk.f32.mxu0 %vm51_vm0, %v25_v40  ;;  %542 = vmatprep.mubr.msk.f32.mxu1 %vm51_vm0, %v41_v41 }
  0x30   :  { %519 = vmatmul.mubr.msk.f32.gmra.mrb[14].mxu0 %vm51_vm0, %v26_v42  ;;  %543 = vmatmul.mubr.msk.f32.gmra.mrb[14].mxu1 %vm51_vm0, %v42_v43 }
  0xe7   :  { %v499_v44 = vpop.f32.mrb[0].mxu0  ;;  %v523_v45 = vpop.f32.mrb[0].mxu1 }
  0xe8   :  { %374 = vst [vmem:[%s834_s2 + $0x8] sm:$0xff] %v499_v44  ;;  %390 = vst [vmem:[%s834_s2 + $0x88] sm:$0xff] %v523_v45  ;;  %v214_v46 = vpop.f32.mrb[1].mxu0  ;;  %v294_v47 = vpop.f32.mrb[1].mxu1 }
  0xe9   :  { %373 = vst [vmem:[%s834_s2] sm:$0xff] %v214_v46  ;;  %389 = vst [vmem:[%s834_s2 + $0x80] sm:$0xff] %v294_v47 }
  0xeb   :  { %v502_v48 = vpop.f32.mrb[2].mxu0  ;;  %v526_v49 = vpop.f32.mrb[2].mxu1 }
  0xec   :  { %376 = vst [vmem:[%s834_s2 + $0x18] sm:$0xff] %v502_v48  ;;  %392 = vst [vmem:[%s834_s2 + $0x98] sm:$0xff] %v526_v49  ;;  %v224_v50 = vpop.f32.mrb[3].mxu0  ;;  %v304_v51 = vpop.f32.mrb[3].mxu1 }
  0xed   :  { %375 = vst [vmem:[%s834_s2 + $0x10] sm:$0xff] %v224_v50  ;;  %391 = vst [vmem:[%s834_s2 + $0x90] sm:$0xff] %v304_v51 }
  0xef   :  { %v505_v52 = vpop.f32.mrb[4].mxu0  ;;  %v529_v53 = vpop.f32.mrb[4].mxu1 }
  0xf0   :  { %378 = vst [vmem:[%s834_s2 + $0x28] sm:$0xff] %v505_v52  ;;  %394 = vst [vmem:[%s834_s2 + $0xa8] sm:$0xff] %v529_v53  ;;  %v234_v54 = vpop.f32.mrb[5].mxu0  ;;  %v314_v55 = vpop.f32.mrb[5].mxu1 }
  0xf1   :  { %377 = vst [vmem:[%s834_s2 + $0x20] sm:$0xff] %v234_v54  ;;  %393 = vst [vmem:[%s834_s2 + $0xa0] sm:$0xff] %v314_v55 }
  0xf3   :  { %v508_v56 = vpop.f32.mrb[6].mxu0  ;;  %v532_v57 = vpop.f32.mrb[6].mxu1 }
  0xf4   :  { %380 = vst [vmem:[%s834_s2 + $0x38] sm:$0xff] %v508_v56  ;;  %396 = vst [vmem:[%s834_s2 + $0xb8] sm:$0xff] %v532_v57  ;;  %v244_v58 = vpop.f32.mrb[7].mxu0  ;;  %v324_v59 = vpop.f32.mrb[7].mxu1 }
  0xf5   :  { %379 = vst [vmem:[%s834_s2 + $0x30] sm:$0xff] %v244_v58  ;;  %395 = vst [vmem:[%s834_s2 + $0xb0] sm:$0xff] %v324_v59 }
  0xf7   :  { %v511_v60 = vpop.f32.mrb[8].mxu0  ;;  %v535_v61 = vpop.f32.mrb[8].mxu1 }
  0xf8   :  { %382 = vst [vmem:[%s834_s2 + $0x48] sm:$0xff] %v511_v60  ;;  %398 = vst [vmem:[%s834_s2 + $0xc8] sm:$0xff] %v535_v61  ;;  %v254_v62 = vpop.f32.mrb[9].mxu0  ;;  %v334_v63 = vpop.f32.mrb[9].mxu1 }
  0xf9   :  { %381 = vst [vmem:[%s834_s2 + $0x40] sm:$0xff] %v254_v62  ;;  %397 = vst [vmem:[%s834_s2 + $0xc0] sm:$0xff] %v334_v63 }
  0xfb   :  { %v514_v0 = vpop.f32.mrb[10].mxu0  ;;  %v538_v1 = vpop.f32.mrb[10].mxu1 }
  0xfc   :  { %384 = vst [vmem:[%s834_s2 + $0x58] sm:$0xff] %v514_v0  ;;  %400 = vst [vmem:[%s834_s2 + $0xd8] sm:$0xff] %v538_v1  ;;  %v264_v2 = vpop.f32.mrb[11].mxu0  ;;  %v344_v3 = vpop.f32.mrb[11].mxu1 }
  0xfd   :  { %383 = vst [vmem:[%s834_s2 + $0x50] sm:$0xff] %v264_v2  ;;  %399 = vst [vmem:[%s834_s2 + $0xd0] sm:$0xff] %v344_v3 }
  0xff   :  { %v517_v4 = vpop.f32.mrb[12].mxu0  ;;  %v541_v5 = vpop.f32.mrb[12].mxu1 }
 0x100   :  { %386 = vst [vmem:[%s834_s2 + $0x68] sm:$0xff] %v517_v4  ;;  %402 = vst [vmem:[%s834_s2 + $0xe8] sm:$0xff] %v541_v5  ;;  %v274_v6 = vpop.f32.mrb[13].mxu0  ;;  %v354_v7 = vpop.f32.mrb[13].mxu1 }
 0x101   :  { %385 = vst [vmem:[%s834_s2 + $0x60] sm:$0xff] %v274_v6  ;;  %401 = vst [vmem:[%s834_s2 + $0xe0] sm:$0xff] %v354_v7 }
 0x103   :  { %v520_v8 = vpop.f32.mrb[14].mxu0  ;;  %v544_v9 = vpop.f32.mrb[14].mxu1 }
 0x104   :  { %388 = vst [vmem:[%s834_s2 + $0x78] sm:$0xff] %v520_v8  ;;  %404 = vst [vmem:[%s834_s2 + $0xf8] sm:$0xff] %v544_v9  ;;  %v284_v10 = vpop.f32.mrb[15].mxu0  ;;  %v364_v11 = vpop.f32.mrb[15].mxu1 }
 0x105   :  { %387 = vst [vmem:[%s834_s2 + $0x70] sm:$0xff] %v284_v10  ;;  %403 = vst [vmem:[%s834_s2 + $0xf0] sm:$0xff] %v364_v11 }

// kernel: graph_convolution.3
= control target key start
LH: loop header
LB: loop body
LE: loop exit
PB: predicated region body
PF: predicated region fallthrough
CT: control target
= control target key end

     0   :  { %s942_s0 = inlined_call_operand.vmem [shape: f32[256,256], index: 0, kind: input, shape index: {}]   ;;  %s943_s1 = inlined_call_operand.vmem [shape: f32[256,128], index: 1, kind: input, shape index: {}]   ;;  %s944_s2 = inlined_call_operand.hbm [shape: f32[256,128], index: 2, kind: output, shape index: {}]  }
   0x1   :  { %v163_v0 = vld [vmem:[%s943_s1 + $0x80] sm:$0xff]  ;;  %v164_v1 = vld [vmem:[%s943_s1 + $0x88] sm:$0xff]  ;;  %v165_v5 = vld [vmem:[%s943_s1 + $0x90] sm:$0xff] }
   0x2   :  { %v147_v2 = vld [vmem:[%s943_s1] sm:$0xff]  ;;  %v187_v3 = vpack.c.bf16 %v164_v1, %v163_v0  ;;  %v148_v4 = vld [vmem:[%s943_s1 + $0x8] sm:$0xff]  ;;  %v166_v6 = vld [vmem:[%s943_s1 + $0x98] sm:$0xff] }
   0x3   :  { %v179_v7 = vpack.c.bf16 %v148_v4, %v147_v2  ;;  %v188_v8 = vpack.c.bf16 %v166_v6, %v165_v5  ;;  %v149_v9 = vld [vmem:[%s943_s1 + $0x10] sm:$0xff]  ;;  %v150_v10 = vld [vmem:[%s943_s1 + $0x18] sm:$0xff]  ;;  %v167_v11 = vld [vmem:[%s943_s1 + $0xa0] sm:$0xff] }
   0x4   :  { %468 = vmatprep.subr.bf16.mxu0 %v187_v3  ;;  %580 = vmatprep.subr.bf16.mxu1 %v187_v3  ;;  %v168_v12 = vld [vmem:[%s943_s1 + $0xa8] sm:$0xff]  ;;  %v180_v13 = vpack.c.bf16 %v150_v10, %v149_v9  ;;  %v151_v15 = vld [vmem:[%s943_s1 + $0x20] sm:$0xff]  ;;  %v169_v17 = vld [vmem:[%s943_s1 + $0xb0] sm:$0xff] }
   0x5   :  { %469 = vmatpush3.bf16.msra.mxu0 %v179_v7  ;;  %588 = vmatpush3.bf16.msra.mxu1 %v179_v7  ;;  %v189_v14 = vpack.c.bf16 %v168_v12, %v167_v11  ;;  %v152_v16 = vld [vmem:[%s943_s1 + $0x28] sm:$0xff]  ;;  %v170_v18 = vld [vmem:[%s943_s1 + $0xb8] sm:$0xff]  ;;  %v153_v21 = vld [vmem:[%s943_s1 + $0x30] sm:$0xff] }
   0x6   :  { %470 = vmatprep.subr.bf16.mxu0 %v188_v8  ;;  %581 = vmatprep.subr.bf16.mxu1 %v188_v8  ;;  %v181_v19 = vpack.c.bf16 %v152_v16, %v151_v15  ;;  %v190_v20 = vpack.c.bf16 %v170_v18, %v169_v17  ;;  %v154_v22 = vld [vmem:[%s943_s1 + $0x38] sm:$0xff]  ;;  %v171_v23 = vld [vmem:[%s943_s1 + $0xc0] sm:$0xff]  ;;  %v172_v24 = vld [vmem:[%s943_s1 + $0xc8] sm:$0xff] }
   0x7   :  { %v51_v25 = vld [vmem:[%s942_s0 + $0x8] sm:$0xff]  ;;  %v53_v26 = vld [vmem:[%s942_s0 + $0x18] sm:$0xff]  ;;  %v182_v29 = vpack.c.bf16 %v154_v22, %v153_v21  ;;  %v191_v32 = vpack.c.bf16 %v172_v24, %v171_v23  ;;  %v155_v33 = vld [vmem:[%s943_s1 + $0x40] sm:$0xff] }
   0x8   :  { %v83_v27 = vld [vmem:[%s942_s0 + $0x108] sm:$0xff]  ;;  %v85_v28 = vld [vmem:[%s942_s0 + $0x118] sm:$0xff]  ;;  %v115_v30 = vpack.c.bf16 %v53_v26, %v51_v25  ;;  %v173_v35 = vld [vmem:[%s943_s1 + $0xd0] sm:$0xff] }
   0x9   :  { %471 = vmatpush3.bf16.msra.mxu0 %v180_v13  ;;  %589 = vmatpush3.bf16.msra.mxu1 %v180_v13  ;;  %v131_v31 = vpack.c.bf16 %v85_v28, %v83_v27  ;;  %v156_v34 = vld [vmem:[%s943_s1 + $0x48] sm:$0xff]  ;;  %v174_v36 = vld [vmem:[%s943_s1 + $0xd8] sm:$0xff]  ;;  %v157_v39 = vld [vmem:[%s943_s1 + $0x50] sm:$0xff] }
   0xa   :  { %472 = vmatprep.subr.bf16.mxu0 %v189_v14  ;;  %582 = vmatprep.subr.bf16.mxu1 %v189_v14  ;;  %v183_v37 = vpack.c.bf16 %v156_v34, %v155_v33  ;;  %v192_v38 = vpack.c.bf16 %v174_v36, %v173_v35  ;;  %v158_v40 = vld [vmem:[%s943_s1 + $0x58] sm:$0xff]  ;;  %v175_v41 = vld [vmem:[%s943_s1 + $0xe0] sm:$0xff]  ;;  %v176_v42 = vld [vmem:[%s943_s1 + $0xe8] sm:$0xff] }
   0xb   :  { %259 = vmatprep.mubr.bf16.mxu0 %v115_v30  ;;  %323 = vmatprep.mubr.bf16.mxu1 %v131_v31  ;;  %v184_v43 = vpack.c.bf16 %v158_v40, %v157_v39  ;;  %v193_v44 = vpack.c.bf16 %v176_v42, %v175_v41  ;;  %v159_v45 = vld [vmem:[%s943_s1 + $0x60] sm:$0xff]  ;;  %v160_v46 = vld [vmem:[%s943_s1 + $0x68] sm:$0xff]  ;;  %v177_v47 = vld [vmem:[%s943_s1 + $0xf0] sm:$0xff] }
   0xc   :  { %v178_v48 = vld [vmem:[%s943_s1 + $0xf8] sm:$0xff]  ;;  %v185_v49 = vpack.c.bf16 %v160_v46, %v159_v45  ;;  %v161_v51 = vld [vmem:[%s943_s1 + $0x70] sm:$0xff]  ;;  %v50_v53 = vld [vmem:[%s942_s0] sm:$0xff] }
   0xd   :  { %473 = vmatpush3.bf16.msra.mxu0 %v181_v19  ;;  %590 = vmatpush3.bf16.msra.mxu1 %v181_v19  ;;  %v194_v50 = vpack.c.bf16 %v178_v48, %v177_v47  ;;  %v162_v52 = vld [vmem:[%s943_s1 + $0x78] sm:$0xff]  ;;  %v52_v54 = vld [vmem:[%s942_s0 + $0x10] sm:$0xff]  ;;  %v82_v56 = vld [vmem:[%s942_s0 + $0x100] sm:$0xff] }
   0xe   :  { %474 = vmatprep.subr.bf16.mxu0 %v190_v20  ;;  %583 = vmatprep.subr.bf16.mxu1 %v190_v20  ;;  %v186_v55 = vpack.c.bf16 %v162_v52, %v161_v51  ;;  %v84_v57 = vld [vmem:[%s942_s0 + $0x110] sm:$0xff]  ;;  %v55_v58 = vld [vmem:[%s942_s0 + $0x28] sm:$0xff]  ;;  %v57_v59 = vld [vmem:[%s942_s0 + $0x38] sm:$0xff]  ;;  %v114_v62 = vpack.c.bf16 %v52_v54, %v50_v53 }
   0xf   :  { %v87_v60 = vld [vmem:[%s942_s0 + $0x128] sm:$0xff]  ;;  %v89_v61 = vld [vmem:[%s942_s0 + $0x138] sm:$0xff]  ;;  %v130_v63 = vpack.c.bf16 %v84_v57, %v82_v56  ;;  %v117_v0 = vpack.c.bf16 %v57_v59, %v55_v58 }
  0x10   :  { %v133_v1 = vpack.c.bf16 %v89_v61, %v87_v60 }
  0x11   :  { %475 = vmatpush3.bf16.msra.mxu0 %v182_v29  ;;  %591 = vmatpush3.bf16.msra.mxu1 %v182_v29 }
  0x12   :  { %476 = vmatprep.subr.bf16.mxu0 %v191_v32  ;;  %584 = vmatprep.subr.bf16.mxu1 %v191_v32 }
  0x15   :  { %477 = vmatpush3.bf16.msra.mxu0 %v183_v37  ;;  %592 = vmatpush3.bf16.msra.mxu1 %v183_v37 }
  0x16   :  { %478 = vmatprep.subr.bf16.mxu0 %v192_v38  ;;  %585 = vmatprep.subr.bf16.mxu1 %v192_v38 }
  0x19   :  { %479 = vmatpush3.bf16.msra.mxu0 %v184_v43  ;;  %593 = vmatpush3.bf16.msra.mxu1 %v184_v43 }
  0x1a   :  { %480 = vmatprep.subr.bf16.mxu0 %v193_v44  ;;  %586 = vmatprep.subr.bf16.mxu1 %v193_v44 }
  0x1d   :  { %481 = vmatpush3.bf16.msra.mxu0 %v185_v49  ;;  %594 = vmatpush3.bf16.msra.mxu1 %v185_v49 }
  0x1e   :  { %482 = vmatprep.subr.bf16.mxu0 %v194_v50  ;;  %587 = vmatprep.subr.bf16.mxu1 %v194_v50 }
  0x21   :  { %483 = vmatpush3.bf16.msra.mxu0 %v186_v55  ;;  %595 = vmatpush3.bf16.msra.mxu1 %v186_v55 }
  0x22   :  { %7 = vsyncpa [#allocation3], 0  ;;  %v54_v2 = vld [vmem:[%s942_s0 + $0x20] sm:$0xff]  ;;  %v56_v3 = vld [vmem:[%s942_s0 + $0x30] sm:$0xff] }
  0x23   :  { %v86_v4 = vld [vmem:[%s942_s0 + $0x120] sm:$0xff]  ;;  %v88_v5 = vld [vmem:[%s942_s0 + $0x130] sm:$0xff]  ;;  %v59_v6 = vld [vmem:[%s942_s0 + $0x48] sm:$0xff]  ;;  %v116_v10 = vpack.c.bf16 %v56_v3, %v54_v2 }
  0x24   :  { %260 = vmatmul.mubr.bf16.vlgmr.msra.gmra.mrb[0].mxu0 %v114_v62  ;;  %324 = vmatmul.mubr.bf16.vlgmr.msra.gmra.mrb[0].mxu1 %v130_v63  ;;  %v61_v7 = vld [vmem:[%s942_s0 + $0x58] sm:$0xff]  ;;  %v91_v8 = vld [vmem:[%s942_s0 + $0x148] sm:$0xff]  ;;  %v132_v11 = vpack.c.bf16 %v88_v5, %v86_v4  ;;  %v58_v14 = vld [vmem:[%s942_s0 + $0x40] sm:$0xff] }
  0x25   :  { %267 = vmatprep.mubr.bf16.mxu0 %v117_v0  ;;  %331 = vmatprep.mubr.bf16.mxu1 %v133_v1  ;;  %v93_v9 = vld [vmem:[%s942_s0 + $0x158] sm:$0xff]  ;;  %v119_v12 = vpack.c.bf16 %v61_v7, %v59_v6  ;;  %v60_v15 = vld [vmem:[%s942_s0 + $0x50] sm:$0xff]  ;;  %v90_v16 = vld [vmem:[%s942_s0 + $0x140] sm:$0xff] }
  0x26   :  { %v135_v13 = vpack.c.bf16 %v93_v9, %v91_v8  ;;  %v92_v17 = vld [vmem:[%s942_s0 + $0x150] sm:$0xff]  ;;  %v63_v18 = vld [vmem:[%s942_s0 + $0x68] sm:$0xff]  ;;  %v65_v19 = vld [vmem:[%s942_s0 + $0x78] sm:$0xff]  ;;  %v118_v22 = vpack.c.bf16 %v60_v15, %v58_v14 }
  0x27   :  { %v95_v20 = vld [vmem:[%s942_s0 + $0x168] sm:$0xff]  ;;  %v97_v21 = vld [vmem:[%s942_s0 + $0x178] sm:$0xff]  ;;  %v134_v23 = vpack.c.bf16 %v92_v17, %v90_v16  ;;  %v121_v24 = vpack.c.bf16 %v65_v19, %v63_v18  ;;  %v62_v26 = vld [vmem:[%s942_s0 + $0x60] sm:$0xff] }
  0x28   :  { %v137_v25 = vpack.c.bf16 %v97_v21, %v95_v20  ;;  %v64_v27 = vld [vmem:[%s942_s0 + $0x70] sm:$0xff]  ;;  %v94_v28 = vld [vmem:[%s942_s0 + $0x160] sm:$0xff]  ;;  %v67_v30 = vld [vmem:[%s942_s0 + $0x88] sm:$0xff] }
  0x29   :  { %v96_v29 = vld [vmem:[%s942_s0 + $0x170] sm:$0xff]  ;;  %v69_v31 = vld [vmem:[%s942_s0 + $0x98] sm:$0xff]  ;;  %v99_v32 = vld [vmem:[%s942_s0 + $0x188] sm:$0xff]  ;;  %v120_v34 = vpack.c.bf16 %v64_v27, %v62_v26 }
  0x2a   :  { %v101_v33 = vld [vmem:[%s942_s0 + $0x198] sm:$0xff]  ;;  %v136_v35 = vpack.c.bf16 %v96_v29, %v94_v28  ;;  %v123_v36 = vpack.c.bf16 %v69_v31, %v67_v30  ;;  %v66_v38 = vld [vmem:[%s942_s0 + $0x80] sm:$0xff]  ;;  %v68_v39 = vld [vmem:[%s942_s0 + $0x90] sm:$0xff] }
  0x2b   :  { %v139_v37 = vpack.c.bf16 %v101_v33, %v99_v32  ;;  %v98_v40 = vld [vmem:[%s942_s0 + $0x180] sm:$0xff]  ;;  %v100_v41 = vld [vmem:[%s942_s0 + $0x190] sm:$0xff]  ;;  %v71_v42 = vld [vmem:[%s942_s0 + $0xa8] sm:$0xff]  ;;  %v122_v46 = vpack.c.bf16 %v68_v39, %v66_v38 }
  0x2c   :  { %268 = vmatmul.mubr.bf16.gmra.mrb[4].mxu0 %v116_v10  ;;  %332 = vmatmul.mubr.bf16.gmra.mrb[4].mxu1 %v132_v11  ;;  %v73_v43 = vld [vmem:[%s942_s0 + $0xb8] sm:$0xff]  ;;  %v103_v44 = vld [vmem:[%s942_s0 + $0x1a8] sm:$0xff]  ;;  %v138_v47 = vpack.c.bf16 %v100_v41, %v98_v40  ;;  %v70_v50 = vld [vmem:[%s942_s0 + $0xa0] sm:$0xff] }
  0x2d   :  { %275 = vmatprep.mubr.bf16.mxu0 %v119_v12  ;;  %339 = vmatprep.mubr.bf16.mxu1 %v135_v13  ;;  %v105_v45 = vld [vmem:[%s942_s0 + $0x1b8] sm:$0xff]  ;;  %v125_v48 = vpack.c.bf16 %v73_v43, %v71_v42  ;;  %v72_v51 = vld [vmem:[%s942_s0 + $0xb0] sm:$0xff]  ;;  %v102_v52 = vld [vmem:[%s942_s0 + $0x1a0] sm:$0xff] }
  0x2e   :  { %v141_v49 = vpack.c.bf16 %v105_v45, %v103_v44  ;;  %v104_v53 = vld [vmem:[%s942_s0 + $0x1b0] sm:$0xff]  ;;  %v75_v54 = vld [vmem:[%s942_s0 + $0xc8] sm:$0xff]  ;;  %v77_v55 = vld [vmem:[%s942_s0 + $0xd8] sm:$0xff]  ;;  %v124_v58 = vpack.c.bf16 %v72_v51, %v70_v50 }
  0x2f   :  { %v107_v56 = vld [vmem:[%s942_s0 + $0x1c8] sm:$0xff]  ;;  %v109_v57 = vld [vmem:[%s942_s0 + $0x1d8] sm:$0xff]  ;;  %v140_v59 = vpack.c.bf16 %v104_v53, %v102_v52  ;;  %v127_v60 = vpack.c.bf16 %v77_v55, %v75_v54  ;;  %v74_v62 = vld [vmem:[%s942_s0 + $0xc0] sm:$0xff] }
  0x30   :  { %v143_v61 = vpack.c.bf16 %v109_v57, %v107_v56  ;;  %v76_v63 = vld [vmem:[%s942_s0 + $0xd0] sm:$0xff]  ;;  %v106_v0 = vld [vmem:[%s942_s0 + $0x1c0] sm:$0xff]  ;;  %v79_v2 = vld [vmem:[%s942_s0 + $0xe8] sm:$0xff] }
  0x31   :  { %v108_v1 = vld [vmem:[%s942_s0 + $0x1d0] sm:$0xff]  ;;  %v81_v3 = vld [vmem:[%s942_s0 + $0xf8] sm:$0xff]  ;;  %v111_v4 = vld [vmem:[%s942_s0 + $0x1e8] sm:$0xff]  ;;  %v126_v6 = vpack.c.bf16 %v76_v63, %v74_v62 }
  0x32   :  { %v113_v5 = vld [vmem:[%s942_s0 + $0x1f8] sm:$0xff]  ;;  %v142_v7 = vpack.c.bf16 %v108_v1, %v106_v0  ;;  %v129_v8 = vpack.c.bf16 %v81_v3, %v79_v2  ;;  %v78_v10 = vld [vmem:[%s942_s0 + $0xe0] sm:$0xff]  ;;  %v80_v11 = vld [vmem:[%s942_s0 + $0xf0] sm:$0xff] }
  0x33   :  { %v145_v9 = vpack.c.bf16 %v113_v5, %v111_v4  ;;  %v110_v12 = vld [vmem:[%s942_s0 + $0x1e0] sm:$0xff]  ;;  %v112_v13 = vld [vmem:[%s942_s0 + $0x1f0] sm:$0xff]  ;;  %v128_v14 = vpack.c.bf16 %v80_v11, %v78_v10  ;;  %s624_s0 = smov [#allocation2]  }
  0x34   :  { %276 = vmatmul.mubr.bf16.gmra.mrb[8].mxu0 %v118_v22  ;;  %340 = vmatmul.mubr.bf16.gmra.mrb[8].mxu1 %v134_v23  ;;  %v144_v15 = vpack.c.bf16 %v112_v13, %v110_v12  ;;  %s457_s29 = sshll.u32 %s624_s0, 4  ;;  %s458_s29 = int_to_ptr.vmem [resolvable:$true] %s457_s29 }
  0x35   :  { %283 = vmatprep.mubr.bf16.mxu0 %v121_v24  ;;  %347 = vmatprep.mubr.bf16.mxu1 %v137_v25  ;;  %s600_s30 = scalar_lea.vmem %s458_s29, 4096  ;;  %p605_p1 = scmp.lt.s32.totalorder %s458_s29, %s458_s29 }
  0x36   :  { %p601_p0 = scmp.ne.s32.totalorder %s458_s29, %s600_s30  ;;  %p606_p2 = scmp.lt.s32.totalorder %s600_s30, %s600_s30 }
  0x38   :  { %p607_p3 = por %p606_p2, %p605_p1 }
  0x3a   :  { %p608_p4 = pnand %p607_p3, %p601_p0 }
  0x3c   :  { %284 = vmatmul.mubr.bf16.gmra.mrb[12].mxu0 %v120_v34  ;;  %348 = vmatmul.mubr.bf16.gmra.mrb[12].mxu1 %v136_v35 }
  0x3d   :  { %291 = vmatprep.mubr.bf16.mxu0 %v123_v36  ;;  %355 = vmatprep.mubr.bf16.mxu1 %v139_v37 }
  0x44   :  { %292 = vmatmul.mubr.bf16.gmra.mrb[16].mxu0 %v122_v46  ;;  %356 = vmatmul.mubr.bf16.gmra.mrb[16].mxu1 %v138_v47 }
  0x45   :  { %299 = vmatprep.mubr.bf16.mxu0 %v125_v48  ;;  %363 = vmatprep.mubr.bf16.mxu1 %v141_v49 }
  0x4c   :  { %300 = vmatmul.mubr.bf16.gmra.mrb[20].mxu0 %v124_v58  ;;  %364 = vmatmul.mubr.bf16.gmra.mrb[20].mxu1 %v140_v59 }
  0x4d   :  { %307 = vmatprep.mubr.bf16.mxu0 %v127_v60  ;;  %371 = vmatprep.mubr.bf16.mxu1 %v143_v61 }
  0x54   :  { %308 = vmatmul.mubr.bf16.gmra.mrb[24].mxu0 %v126_v6  ;;  %372 = vmatmul.mubr.bf16.gmra.mrb[24].mxu1 %v142_v7 }
  0x55   :  { %315 = vmatprep.mubr.bf16.mxu0 %v129_v8  ;;  %379 = vmatprep.mubr.bf16.mxu1 %v145_v9 }
  0x5c   :  { %316 = vmatmul.mubr.bf16.gmra.mrb[28].mxu0 %v128_v14  ;;  %380 = vmatmul.mubr.bf16.gmra.mrb[28].mxu1 %v144_v15 }
  0xf7   :  { %v484_v16 = vpop.f32.mrb[0].mxu0  ;;  %v532_v17 = vpop.f32.mrb[0].mxu1 }
  0xf8   :  { %v485_v18 = vpop.f32.mrb[1].mxu0  ;;  %v533_v19 = vpop.f32.mrb[1].mxu1 }
  0xf9   :  { %v486_v20 = vadd.f32 %v485_v18, %v484_v16  ;;  %v534_v21 = vadd.f32 %v533_v19, %v532_v17  ;;  %v487_v22 = vpop.f32.mrb[2].mxu0  ;;  %v535_v23 = vpop.f32.mrb[2].mxu1 }
  0xfa   :  { %v488_v24 = vpop.f32.mrb[3].mxu0  ;;  %v536_v25 = vpop.f32.mrb[3].mxu1 }
  0xfb   :  { %v489_v26 = vadd.f32 %v488_v24, %v487_v22  ;;  %v537_v27 = vadd.f32 %v536_v25, %v535_v23  ;;  %420 = vst [vmem:[#allocation2] sm:$0xff] %v486_v20  ;;  %436 = vst [vmem:[#allocation2 + $0x80] sm:$0xff] %v534_v21 }
  0xfd   :  { %421 = vst [vmem:[#allocation2 + $0x8] sm:$0xff] %v489_v26  ;;  %437 = vst [vmem:[#allocation2 + $0x88] sm:$0xff] %v537_v27 }
  0xff   :  { %v490_v28 = vpop.f32.mrb[4].mxu0  ;;  %v538_v29 = vpop.f32.mrb[4].mxu1 }
 0x100   :  { %v491_v30 = vpop.f32.mrb[5].mxu0  ;;  %v539_v31 = vpop.f32.mrb[5].mxu1 }
 0x101   :  { %v492_v32 = vadd.f32 %v491_v30, %v490_v28  ;;  %v540_v33 = vadd.f32 %v539_v31, %v538_v29  ;;  %v493_v34 = vpop.f32.mrb[6].mxu0  ;;  %v541_v35 = vpop.f32.mrb[6].mxu1 }
 0x102   :  { %v494_v36 = vpop.f32.mrb[7].mxu0  ;;  %v542_v37 = vpop.f32.mrb[7].mxu1 }
 0x103   :  { %v495_v38 = vadd.f32 %v494_v36, %v493_v34  ;;  %v543_v39 = vadd.f32 %v542_v37, %v541_v35  ;;  %422 = vst [vmem:[#allocation2 + $0x10] sm:$0xff] %v492_v32  ;;  %438 = vst [vmem:[#allocation2 + $0x90] sm:$0xff] %v540_v33 }
 0x105   :  { %423 = vst [vmem:[#allocation2 + $0x18] sm:$0xff] %v495_v38  ;;  %439 = vst [vmem:[#allocation2 + $0x98] sm:$0xff] %v543_v39 }
 0x107   :  { %v496_v40 = vpop.f32.mrb[8].mxu0  ;;  %v544_v41 = vpop.f32.mrb[8].mxu1 }
 0x108   :  { %v497_v42 = vpop.f32.mrb[9].mxu0  ;;  %v545_v43 = vpop.f32.mrb[9].mxu1 }
 0x109   :  { %v498_v44 = vadd.f32 %v497_v42, %v496_v40  ;;  %v546_v45 = vadd.f32 %v545_v43, %v544_v41  ;;  %v499_v46 = vpop.f32.mrb[10].mxu0  ;;  %v547_v47 = vpop.f32.mrb[10].mxu1 }
 0x10a   :  { %v500_v48 = vpop.f32.mrb[11].mxu0  ;;  %v548_v49 = vpop.f32.mrb[11].mxu1 }
 0x10b   :  { %v501_v50 = vadd.f32 %v500_v48, %v499_v46  ;;  %v549_v51 = vadd.f32 %v548_v49, %v547_v47  ;;  %424 = vst [vmem:[#allocation2 + $0x20] sm:$0xff] %v498_v44  ;;  %440 = vst [vmem:[#allocation2 + $0xa0] sm:$0xff] %v546_v45 }
 0x10d   :  { %425 = vst [vmem:[#allocation2 + $0x28] sm:$0xff] %v501_v50  ;;  %441 = vst [vmem:[#allocation2 + $0xa8] sm:$0xff] %v549_v51 }
 0x10f   :  { %v502_v52 = vpop.f32.mrb[12].mxu0  ;;  %v550_v53 = vpop.f32.mrb[12].mxu1 }
 0x110   :  { %v503_v54 = vpop.f32.mrb[13].mxu0  ;;  %v551_v55 = vpop.f32.mrb[13].mxu1 }
 0x111   :  { %v504_v56 = vadd.f32 %v503_v54, %v502_v52  ;;  %v552_v57 = vadd.f32 %v551_v55, %v550_v53  ;;  %v505_v58 = vpop.f32.mrb[14].mxu0  ;;  %v553_v59 = vpop.f32.mrb[14].mxu1 }
 0x112   :  { %v506_v60 = vpop.f32.mrb[15].mxu0  ;;  %v554_v61 = vpop.f32.mrb[15].mxu1 }
 0x113   :  { %v507_v62 = vadd.f32 %v506_v60, %v505_v58  ;;  %v555_v63 = vadd.f32 %v554_v61, %v553_v59  ;;  %426 = vst [vmem:[#allocation2 + $0x30] sm:$0xff] %v504_v56  ;;  %442 = vst [vmem:[#allocation2 + $0xb0] sm:$0xff] %v552_v57 }
 0x115   :  { %427 = vst [vmem:[#allocation2 + $0x38] sm:$0xff] %v507_v62  ;;  %443 = vst [vmem:[#allocation2 + $0xb8] sm:$0xff] %v555_v63 }
 0x117   :  { %v508_v0 = vpop.f32.mrb[16].mxu0  ;;  %v556_v1 = vpop.f32.mrb[16].mxu1 }
 0x118   :  { %v509_v2 = vpop.f32.mrb[17].mxu0  ;;  %v557_v3 = vpop.f32.mrb[17].mxu1 }
 0x119   :  { %v510_v4 = vadd.f32 %v509_v2, %v508_v0  ;;  %v558_v5 = vadd.f32 %v557_v3, %v556_v1  ;;  %v511_v6 = vpop.f32.mrb[18].mxu0  ;;  %v559_v7 = vpop.f32.mrb[18].mxu1 }
 0x11a   :  { %v512_v8 = vpop.f32.mrb[19].mxu0  ;;  %v560_v9 = vpop.f32.mrb[19].mxu1 }
 0x11b   :  { %v513_v10 = vadd.f32 %v512_v8, %v511_v6  ;;  %v561_v11 = vadd.f32 %v560_v9, %v559_v7  ;;  %428 = vst [vmem:[#allocation2 + $0x40] sm:$0xff] %v510_v4  ;;  %444 = vst [vmem:[#allocation2 + $0xc0] sm:$0xff] %v558_v5 }
 0x11d   :  { %429 = vst [vmem:[#allocation2 + $0x48] sm:$0xff] %v513_v10  ;;  %445 = vst [vmem:[#allocation2 + $0xc8] sm:$0xff] %v561_v11 }
 0x11f   :  { %v514_v12 = vpop.f32.mrb[20].mxu0  ;;  %v562_v13 = vpop.f32.mrb[20].mxu1 }
 0x120   :  { %v515_v14 = vpop.f32.mrb[21].mxu0  ;;  %v563_v15 = vpop.f32.mrb[21].mxu1 }
 0x121   :  { %v516_v16 = vadd.f32 %v515_v14, %v514_v12  ;;  %v564_v17 = vadd.f32 %v563_v15, %v562_v13  ;;  %v517_v18 = vpop.f32.mrb[22].mxu0  ;;  %v565_v19 = vpop.f32.mrb[22].mxu1 }
 0x122   :  { %v518_v20 = vpop.f32.mrb[23].mxu0  ;;  %v566_v21 = vpop.f32.mrb[23].mxu1 }
 0x123   :  { %v519_v22 = vadd.f32 %v518_v20, %v517_v18  ;;  %v567_v23 = vadd.f32 %v566_v21, %v565_v19  ;;  %430 = vst [vmem:[#allocation2 + $0x50] sm:$0xff] %v516_v16  ;;  %446 = vst [vmem:[#allocation2 + $0xd0] sm:$0xff] %v564_v17 }
 0x125   :  { %431 = vst [vmem:[#allocation2 + $0x58] sm:$0xff] %v519_v22  ;;  %447 = vst [vmem:[#allocation2 + $0xd8] sm:$0xff] %v567_v23 }
 0x127   :  { %v520_v24 = vpop.f32.mrb[24].mxu0  ;;  %v568_v25 = vpop.f32.mrb[24].mxu1 }
 0x128   :  { %v521_v26 = vpop.f32.mrb[25].mxu0  ;;  %v569_v27 = vpop.f32.mrb[25].mxu1 }
 0x129   :  { %v522_v28 = vadd.f32 %v521_v26, %v520_v24  ;;  %v570_v29 = vadd.f32 %v569_v27, %v568_v25  ;;  %v523_v30 = vpop.f32.mrb[26].mxu0  ;;  %v571_v31 = vpop.f32.mrb[26].mxu1 }
 0x12a   :  { %v524_v32 = vpop.f32.mrb[27].mxu0  ;;  %v572_v33 = vpop.f32.mrb[27].mxu1 }
 0x12b   :  { %v525_v34 = vadd.f32 %v524_v32, %v523_v30  ;;  %v573_v35 = vadd.f32 %v572_v33, %v571_v31  ;;  %432 = vst [vmem:[#allocation2 + $0x60] sm:$0xff] %v522_v28  ;;  %448 = vst [vmem:[#allocation2 + $0xe0] sm:$0xff] %v570_v29 }
 0x12d   :  { %433 = vst [vmem:[#allocation2 + $0x68] sm:$0xff] %v525_v34  ;;  %449 = vst [vmem:[#allocation2 + $0xe8] sm:$0xff] %v573_v35 }
 0x12f   :  { %v526_v36 = vpop.f32.mrb[28].mxu0  ;;  %v574_v37 = vpop.f32.mrb[28].mxu1 }
 0x130   :  { %v527_v38 = vpop.f32.mrb[29].mxu0  ;;  %v575_v39 = vpop.f32.mrb[29].mxu1 }
 0x131   :  { %v528_v40 = vadd.f32 %v527_v38, %v526_v36  ;;  %v576_v41 = vadd.f32 %v575_v39, %v574_v37  ;;  %v529_v42 = vpop.f32.mrb[30].mxu0  ;;  %v577_v43 = vpop.f32.mrb[30].mxu1 }
 0x132   :  { %v530_v44 = vpop.f32.mrb[31].mxu0  ;;  %v578_v45 = vpop.f32.mrb[31].mxu1 }
 0x133   :  { %v531_v46 = vadd.f32 %v530_v44, %v529_v42  ;;  %v579_v47 = vadd.f32 %v578_v45, %v577_v43  ;;  %434 = vst [vmem:[#allocation2 + $0x70] sm:$0xff] %v528_v40  ;;  %450 = vst [vmem:[#allocation2 + $0xf0] sm:$0xff] %v576_v41 }
 0x135   :  { %435 = vst [vmem:[#allocation2 + $0x78] sm:$0xff] %v531_v46  ;;  %451 = vst [vmem:[#allocation2 + $0xf8] sm:$0xff] %v579_v47 }
 0x136   :  { %611 = shalt.err (!%p608_p4)
}
 0x137   :  { %s612_s1 = scalar_lea.hbm %s944_s2, 4096 }
 0x138   :  { %p613_p5 = scmp.ne.s32.totalorder %s944_s2, %s612_s1  ;;  %p616_p6 = scmp.lt.u32.totalorder %s612_s1, %s944_s2 }
 0x13a   :  { %p618_p7 = pnand %p616_p6, %p613_p5 }
 0x13c   :  { %621 = shalt.err (!%p618_p7)
}
 0x13d   :  { %s625_s9 = smov 128   ;;  %s626_s10 = smov 8  }
 0x13e   :  { %463 = dma.vmem_to_hbm [thread:$0]  %s458_s29, 4096, %s944_s2, [#allocation3], %s625_s9, %s625_s9, %s626_s10  }
 0x13f   :  { %622 = dma.done.wait [#allocation3], 4096  }
 0x140   :  { %623 = vsyncadd [#allocation3], 4294963200 }
 0x141   :  { %467 = vsyncpa [#allocation3], 1 }

</bundles_post_ra>
